<compile_context>
chip_gen: v7x
topology: tpu7x:2x2x1
jax: 0.10.0
libtpu: 0.0.40
codegen_flags: <defaults>
</compile_context>

<pallas_src>
import functools

import jax
import jax.numpy as jnp
from jax import lax
from jax.experimental import pallas as pl
from jax.experimental.pallas import tpu as pltpu

N_EMBED = 50          # n_embed in the reference module
BLOCK_SIZE = 60       # max sequence length (tril buffer size) — T must be <= this


def _head_kernel(x_ref, w_ref, b_ref, o_ref, *, head_size, scale):
    # x_ref: (bb, T, C) f32, w_ref: (C, 3H) bf16, b_ref: (1, 3H) f32,
    # o_ref: (bb, T, H)
    bb, t, c = x_ref.shape
    h = head_size

    # Fused QKV projection: collapse (bb, T) rows, bf16 operands, f32 accumulate.
    x2d = x_ref[...].reshape(bb * t, c).astype(jnp.bfloat16)
    qkv = jnp.dot(x2d, w_ref[...],
                  preferred_element_type=jnp.float32) + b_ref[...]   # (bb*T, 3H) f32

    # Slice q/k/v; fold the softmax scale (C ** -0.5) into q.
    q = (qkv[:, 0 * h:1 * h] * scale).reshape(bb, t, h)
    k = qkv[:, 1 * h:2 * h].reshape(bb, t, h)
    v = qkv[:, 2 * h:3 * h].reshape(bb, t, h)

    # Attention scores: contraction over the head dim of both operands
    # (no explicit transpose); bf16 operands, f32 accumulation.
    wei = jnp.einsum('bth,bsh->bts',
                     q.astype(jnp.bfloat16), k.astype(jnp.bfloat16),
                     preferred_element_type=jnp.float32)              # (bb, T, T)

    # Causal (lower-triangular) mask == tril[:T, :T]. Diagonal is always
    # unmasked, so no row is all -inf (safe max-subtract softmax).
    row = lax.broadcasted_iota(jnp.int32, (bb, t, t), 1)
    col = lax.broadcasted_iota(jnp.int32, (bb, t, t), 2)
    wei = jnp.where(col <= row, wei, -jnp.inf)

    # Numerically-stable softmax over the last dim; keep all of it in f32.
    m = jnp.max(wei, axis=-1, keepdims=True)
    p = jnp.exp(wei - m)
    inv_l = pl.reciprocal(jnp.sum(p, axis=-1, keepdims=True), approx=True)
    wei = p * inv_l

    # dropout: identity (eval mode)

    out = jnp.einsum('bts,bsh->bth',
                     wei.astype(jnp.bfloat16), v.astype(jnp.bfloat16),
                     preferred_element_type=jnp.float32)              # (bb, T, H)
    o_ref[...] = out.astype(o_ref.dtype)


def head_forward(x, wq, wk, wv, bq, bk, bv):
    """Single-head causal self-attention.  x: (B, T, C) -> (B, T, H)."""
    B, T, C = x.shape
    H = wq.shape[1]
    assert T <= BLOCK_SIZE, "sequence length exceeds block_size"
    scale = float(C) ** -0.5

    # Fuse the three projections: W = [Wq | Wk | Wv] (C, 3H), b = (1, 3H).
    # Weight is pre-cast to bf16 (halves its DMA bytes; matmul accumulates f32).
    w = jnp.concatenate([wq, wk, wv], axis=1).astype(jnp.bfloat16)
    b = jnp.concatenate([bq, bk, bv], axis=0).reshape(1, 3 * H).astype(jnp.float32)

    # Batch tiling: keep >= 2 parallel grid steps whenever possible so both
    # v7x TensorCores get work; otherwise fall back to one batch per step.
    if B >= 2 and B % 2 == 0:
        n_steps = 2
    else:
        n_steps = max(B, 1)
    bb = B // n_steps

    kernel = functools.partial(_head_kernel, head_size=H, scale=scale)

    # Weights/bias use a constant index_map so they stay resident across steps.
    # (pl.Buffered(1) on them would save one redundant VMEM buffer; skipped as
    # a trivial win.)
    grid_spec = pltpu.PrefetchScalarGridSpec(
        num_scalar_prefetch=0,
        grid=(n_steps,),
        in_specs=[
            pl.BlockSpec((bb, T, C), lambda i: (i, 0, 0)),     # x  (bb batches/step)
            pl.BlockSpec((C, 3 * H), lambda i: (0, 0)),        # fused Wqkv
            pl.BlockSpec((1, 3 * H), lambda i: (0, 0)),        # fused bias
        ],
        out_specs=pl.BlockSpec((bb, T, H), lambda i: (i, 0, 0)),
    )

    return pl.pallas_call(
        kernel,
        out_shape=jax.ShapeDtypeStruct((B, T, H), x.dtype),
        grid_spec=grid_spec,
        compiler_params=pltpu.CompilerParams(
            dimension_semantics=("parallel",)),
    )(x, w, b)


def _init_linear(key, fan_in, fan_out):
    """Deterministic init mimicking nn.Linear: U(-1/sqrt(fan_in), 1/sqrt(fan_in))."""
    kw, kb = jax.random.split(key)
    bound = 1.0 / (fan_in ** 0.5)
    w = jax.random.uniform(kw, (fan_in, fan_out), jnp.float32, -bound, bound)
    b = jax.random.uniform(kb, (fan_out,), jnp.float32, -bound, bound)
    return w, b


if __name__ == "__main__":
    key = jax.random.PRNGKey(0)
    k_x, k_q, k_k, k_v = jax.random.split(key, 4)

    B, T, C = 2, 8, N_EMBED   # small seq, embedding fixed at n_embed = 50
    head_size = 16

    x = jax.random.normal(k_x, (B, T, C), dtype=jnp.float32)
    wq, bq = _init_linear(k_q, C, head_size)
    wk, bk = _init_linear(k_k, C, head_size)
    wv, bv = _init_linear(k_v, C, head_size)

    out = head_forward(x, wq, wk, wv, bq, bk, bv)
    out = jax.block_until_ready(out)

    # Pure-JAX f32 reference check (eval-mode dropout = identity).
    q = x @ wq + bq
    k = x @ wk + bk
    v = x @ wv + bv
    wei = (q @ jnp.swapaxes(k, -2, -1)) * (C ** -0.5)
    mask = jnp.tril(jnp.ones((T, T), dtype=bool))
    wei = jnp.where(mask, wei, -jnp.inf)
    wei = jax.nn.softmax(wei, axis=-1)
    ref = wei @ v

    assert out.shape == (B, T, head_size)
    # Looser tolerance than before: kernel uses bf16 MXU operands (f32 accum)
    # and an approx EUP reciprocal; reference is pure f32.
    assert jnp.allclose(out, ref, atol=2e-2, rtol=2e-2), (
        float(jnp.max(jnp.abs(out - ref))))
    print("KERNEL_OK")
</pallas_src>

<mosaic_0001>
module attributes {stable_mosaic.version = 11 : i64} {
  func.func @_head_kernel(%arg0: i32, %arg1: memref<1x8x50xf32, #tpu.memory_space<vmem>>, %arg2: memref<50x48xbf16, #tpu.memory_space<vmem>>, %arg3: memref<1x48xf32, #tpu.memory_space<vmem>>, %arg4: memref<1x8x16xf32, #tpu.memory_space<vmem>>) attributes {dimension_semantics = [#tpu.dimension_semantics<parallel>], iteration_bounds = array<i64: 2>, scalar_prefetch = 0 : i64, scratch_operands = 0 : i64, tpu.core_type = #tpu.core_type<tc>, window_params = [{transform_indices = @transform_0, window_bounds = array<i64: 1, 8, 50>}, {pipeline_mode = #tpu.pipeline_mode<synchronous>, transform_indices = @transform_1, window_bounds = array<i64: 50, 48>}, {pipeline_mode = #tpu.pipeline_mode<synchronous>, transform_indices = @transform_2, window_bounds = array<i64: 1, 48>}, {transform_indices = @transform_3, window_bounds = array<i64: 1, 8, 16>}]} {
    %c0 = arith.constant 0 : index
    %c0_0 = arith.constant 0 : index
    %c0_1 = arith.constant 0 : index
    %0 = vector.load %arg1[%c0, %c0_0, %c0_1] : memref<1x8x50xf32, #tpu.memory_space<vmem>>, vector<1x8x50xf32>
    %1 = vector.shape_cast %0 : vector<1x8x50xf32> to vector<8x50xf32>
    %2 = arith.truncf %1 : vector<8x50xf32> to vector<8x50xbf16>
    %c0_2 = arith.constant 0 : index
    %c0_3 = arith.constant 0 : index
    %3 = vector.load %arg2[%c0_2, %c0_3] : memref<50x48xbf16, #tpu.memory_space<vmem>>, vector<50x48xbf16>
    %cst = arith.constant dense<0.000000e+00> : vector<8x48xf32>
    %4 = tpu.matmul %2, %3, %cst {dimension_numbers = #tpu.dot_dimension_numbers<[1], [0], [0], [1], [0, 0, 1, 1], [], []>} : vector<8x50xbf16>, vector<50x48xbf16>, vector<8x48xf32> -> vector<8x48xf32>
    %c0_4 = arith.constant 0 : index
    %c0_5 = arith.constant 0 : index
    %5 = vector.load %arg3[%c0_4, %c0_5] : memref<1x48xf32, #tpu.memory_space<vmem>>, vector<1x48xf32>
    %6 = vector.broadcast %5 : vector<1x48xf32> to vector<8x48xf32>
    %7 = arith.addf %4, %6 : vector<8x48xf32>
    %8 = vector.extract_strided_slice %7 {offsets = [0, 0], sizes = [8, 16], strides = [1, 1]} : vector<8x48xf32> to vector<8x16xf32>
    %cst_6 = arith.constant 0.141421363 : f32
    %9 = vector.broadcast %cst_6 : f32 to vector<8x16xf32>
    %10 = arith.mulf %8, %9 : vector<8x16xf32>
    %11 = vector.shape_cast %10 : vector<8x16xf32> to vector<1x8x16xf32>
    %12 = vector.extract_strided_slice %7 {offsets = [0, 16], sizes = [8, 16], strides = [1, 1]} : vector<8x48xf32> to vector<8x16xf32>
    %13 = vector.shape_cast %12 : vector<8x16xf32> to vector<1x8x16xf32>
    %14 = vector.extract_strided_slice %7 {offsets = [0, 32], sizes = [8, 16], strides = [1, 1]} : vector<8x48xf32> to vector<8x16xf32>
    %15 = vector.shape_cast %14 : vector<8x16xf32> to vector<1x8x16xf32>
    %16 = arith.truncf %11 : vector<1x8x16xf32> to vector<1x8x16xbf16>
    %17 = arith.truncf %13 : vector<1x8x16xf32> to vector<1x8x16xbf16>
    "tpu.trace_start"() <{level = 10 : i32, message = "bth,bsh->bts"}> : () -> ()
    %cst_7 = arith.constant dense<0.000000e+00> : vector<1x8x8xf32>
    %18 = tpu.matmul %16, %17, %cst_7 {dimension_numbers = #tpu.dot_dimension_numbers<[2], [2], [1], [1], [0, 0, 0, 1, 1, 1], [0], [0]>} : vector<1x8x16xbf16>, vector<1x8x16xbf16>, vector<1x8x8xf32> -> vector<1x8x8xf32>
    "tpu.trace_stop"() : () -> ()
    %19 = tpu.iota {dimensions = array<i32: 1>} : vector<1x8x8xi32>
    %20 = tpu.iota {dimensions = array<i32: 2>} : vector<1x8x8xi32>
    %21 = arith.cmpi sle, %20, %19 : vector<1x8x8xi32>
    %cst_8 = arith.constant 0xFF800000 : f32
    %22 = vector.broadcast %cst_8 : f32 to vector<1x8x8xf32>
    %23 = arith.select %21, %18, %22 : vector<1x8x8xi1>, vector<1x8x8xf32>
    %cst_9 = arith.constant dense<0xFF800000> : vector<1x8xf32>
    %24 = vector.multi_reduction <maximumf>, %23, %cst_9 [2] : vector<1x8x8xf32> to vector<1x8xf32>
    %25 = vector.shape_cast %24 : vector<1x8xf32> to vector<1x8x1xf32>
    %26 = vector.broadcast %25 : vector<1x8x1xf32> to vector<1x8x8xf32>
    %27 = arith.subf %23, %26 : vector<1x8x8xf32>
    %28 = math.exp %27 : vector<1x8x8xf32>
    %cst_10 = arith.constant dense<0.000000e+00> : vector<1x8xf32>
    %29 = vector.multi_reduction <add>, %28, %cst_10 [2] : vector<1x8x8xf32> to vector<1x8xf32>
    %30 = vector.shape_cast %29 : vector<1x8xf32> to vector<1x8x1xf32>
    %31 = tpu.reciprocal %30 {approx = true} : vector<1x8x1xf32> -> vector<1x8x1xf32>
    %32 = vector.broadcast %31 : vector<1x8x1xf32> to vector<1x8x8xf32>
    %33 = arith.mulf %28, %32 : vector<1x8x8xf32>
    %34 = arith.truncf %33 : vector<1x8x8xf32> to vector<1x8x8xbf16>
    %35 = arith.truncf %15 : vector<1x8x16xf32> to vector<1x8x16xbf16>
    "tpu.trace_start"() <{level = 10 : i32, message = "bts,bsh->bth"}> : () -> ()
    %cst_11 = arith.constant dense<0.000000e+00> : vector<1x8x16xf32>
    %36 = tpu.matmul %34, %35, %cst_11 {dimension_numbers = #tpu.dot_dimension_numbers<[2], [1], [1], [2], [0, 0, 0, 1, 1, 2], [0], [0]>} : vector<1x8x8xbf16>, vector<1x8x16xbf16>, vector<1x8x16xf32> -> vector<1x8x16xf32>
    "tpu.trace_stop"() : () -> ()
    %c0_12 = arith.constant 0 : index
    %c0_13 = arith.constant 0 : index
    %c0_14 = arith.constant 0 : index
    %37 = vector.load %arg4[%c0_12, %c0_13, %c0_14] : memref<1x8x16xf32, #tpu.memory_space<vmem>>, vector<1x8x16xf32>
    tpu.vector_store %arg4[%c0_12, %c0_13, %c0_14], %36 {strides = array<i32>} : memref<1x8x16xf32, #tpu.memory_space<vmem>>, vector<1x8x16xf32>,
    return
  }
  func.func @transform_0(%arg0: i32) -> (i32, i32, i32) {
    %c0_i32 = arith.constant 0 : i32
    %c0_i32_0 = arith.constant 0 : i32
    %c0_i32_1 = arith.constant 0 : i32
    return %arg0, %c0_i32, %c0_i32_0 : i32, i32, i32
  }
  func.func @transform_1(%arg0: i32) -> (i32, i32) {
    %c0_i32 = arith.constant 0 : i32
    %c0_i32_0 = arith.constant 0 : i32
    %c0_i32_1 = arith.constant 0 : i32
    return %c0_i32, %c0_i32_0 : i32, i32
  }
  func.func @transform_2(%arg0: i32) -> (i32, i32) {
    %c0_i32 = arith.constant 0 : i32
    %c0_i32_0 = arith.constant 0 : i32
    %c0_i32_1 = arith.constant 0 : i32
    return %c0_i32, %c0_i32_0 : i32, i32
  }
  func.func @transform_3(%arg0: i32) -> (i32, i32, i32) {
    %c0_i32 = arith.constant 0 : i32
    %c0_i32_0 = arith.constant 0 : i32
    %c0_i32_1 = arith.constant 0 : i32
    return %arg0, %c0_i32, %c0_i32_0 : i32, i32, i32
  }
}

</mosaic_0001>

<bundles_post_ra>
// kernel: tpu_custom_call.1
= control target key start
LH: loop header
LB: loop body
LE: loop exit
PB: predicated region body
PF: predicated region fallthrough
CT: control target
= control target key end

     0   :  { %8 = vsyncpa [#allocation3], 0  ;;  %s762_s0 = inlined_call_operand.vmem [shape: f32[2,8,50], index: 0, kind: input, shape index: {}]   ;;  %s763_s1 = inlined_call_operand.vmem [shape: bf16[50,48], index: 1, kind: input, shape index: {}]   ;;  %s764_s2 = inlined_call_operand.vmem [shape: f32[1,48], index: 2, kind: input, shape index: {}]   ;;  %s765_s3 = inlined_call_operand.hbm [shape: f32[2,8,16], index: 3, kind: output, shape index: {}]  }
   0x1   :  { %10 = vsyncpa [#allocation3 + $0x1], 0  ;;  %s638_s12 = smov 0   ;;  %s640_s13 = smov 0  }
   0x2   :  { %s642_s14 = smov 0   ;;  %s644_s15 = smov 0  }
   0x3 LB: > { %s659_s16 = sadd.s32 4294967295, %s611_s15   ;;  %s447_s17 = sadd.s32 4294967294, %s611_s15   ;;  %s611_s15 = sphi %s644_s15, %s771_s15   ;;  %s607_s14 = sphi %s642_s14, %s770_s14   ;;  %s603_s13 = sphi %s640_s13, %s769_s13   ;;  %s599_s12 = sphi %s638_s12, %s768_s12  }
   0x4   : > { %s663_s18 = sadd.s32 1, %s611_s15   ;;  %s91_s19 = sadd.s32 1, %s607_s14 }
   0x5   : > { %s88_s20 = ssub.s32 %s611_s15, %s663_s18  ;;  %p101_p0 = scmp.ne.s32.totalorder %s607_s14, %s603_s13 }
   0x6   : > { %p89_p1 = scmp.eq.s32.totalorder %s88_s20, 0  ;;  %p102_p2 = scmp.eq.s32.totalorder %s659_s16, 1 }
   0x7   : > { %p107_p3 = scmp.ne.s32.totalorder %s603_s13, %s599_s12  ;;  %p108_p4 = scmp.eq.s32.totalorder %s447_s17, 1 }
   0x8   : > { %s674_s21 = scalar_select %p89_p1, %s607_s14, %s91_s19  }
   0x9   : > { %p676_p5 = por %p102_p2, %p101_p0  ;;  %p680_p6 = por %p108_p4, %p107_p3 }
   0xa   : > { %p450_p7 = scmp.ge.s32.totalorder %s611_s15, 1  ;;  %p139_p8 = scmp.lt.s32.totalorder %s611_s15, 3 }
   0xc   : > { %p140_p9 = pnand %p450_p7, %p139_p8 }
   0xd   : > { %v541_v0 = vld [vmem:[%s763_s1] sm:$0xff] (!%p140_p9)   ;;  %v613_v1 = vmov (!%p140_p9), 0.0   ;;  %v542_v2 = vld [vmem:[%s763_s1 + $0x8] sm:$0xff] (!%p140_p9)   ;;  %vm614_vm0 = vmmov (!%p140_p9), 0   ;;  %p162_p10 = scmp.lt.s32.totalorder (!%p140_p9), %s659_s16, 1  ;;  %v543_v3 = vld [vmem:[%s763_s1 + $0x10] sm:$0xff] (!%p140_p9)   ;;  %v305_v19 = vlaneseq (!%p140_p9) }
   0xe   : > { %143 = sbr.rel (%p140_p9) target bundleno = 1125 (0x465), region = 32  ;;  %474 = vmatprep.subr.bf16.mxu0 (!%p140_p9), %v613_v1  ;;  %486 = vmatprep.subr.bf16.mxu1 (!%p140_p9), %v613_v1  ;;  %v544_v4 = vld [vmem:[%s763_s1 + $0x18] ss:$0 sps:$4 sm:$0x11] (!%p140_p9)   ;;  %vm208_vm1 = vcmask (!%p140_p9), 1040384   ;;  %vm204_vm2 = vcmask (!%p140_p9), 408576  }
   0xf   : > { %475 = vmatpush3.bf16.msra.mxu0 (!%p140_p9), %v541_v0  ;;  %482 = vmatprep.mubr.msk.bf16.mxu0 (!%p140_p9), %vm614_vm0, %v613_v1  ;;  %v210_v6 = vsel (!%p140_p9), %vm208_vm1, %v544_v4, 0  ;;  %v453_v8 = vld [vmem:[%s764_s2] ss:$0 sm:$0xff] (!%p140_p9)  ;;  %s615_s17 = smov (!%p140_p9), 112   ;;  %vm258_vm3 = vcmask (!%p140_p9), 130048   ;;  %v306_v20 = vshrl.u32 (!%p140_p9), %v305_v19, 7 }
  0x10   : > { %476 = vmatprep.subr.bf16.mxu0 (!%p140_p9), %v613_v1  ;;  %488 = vmatprep.mubr.msk.bf16.mxu1 (!%p140_p9), %vm614_vm0, %v613_v1  ;;  %v308_v21 = vand.u32 (!%p140_p9), 127, %v305_v19  ;;  %vm311_vm5 = vcmask (!%p140_p9), 64512   ;;  %s616_s19 = smov (!%p140_p9), 96   ;;  %vm329_vm6 = vcmask (!%p140_p9), 1043456   ;;  %s159_s20 = sand.u32 (!%p140_p9), 1, %s603_s13  }
  0x11   : > { %s451_s24 = sshll.u32 (!%p140_p9), %s159_s20, 3  ;;  %s462_s25 = sshll.u32 (!%p140_p9), %s659_s16, 7 }
  0x12   : > { %vm309_vm4 = vcmp.le.s32.totalorder (!%p140_p9), %v308_v21, %v306_v20  ;;  %s161_s26 = scalar_lea.vmem (!%p140_p9), [#allocation2], %s451_s24  ;;  %s719_s30 = scalar_lea.hbm (!%p140_p9), %s765_s3, %s462_s25 }
  0x13   : > { %477 = vmatpush3.bf16.msra.mxu0 (!%p140_p9), %v542_v2  ;;  %s388_s27 = sshll.u32 (!%p140_p9), %s161_s26, 4  ;;  %s375_s4 = scalar_lea.sflag (!%p140_p9), [#allocation3], %s159_s20  ;;  %s721_s27 = int_to_ptr.vmem [resolvable:$true] %s388_s27 }
  0x14   : > { %478 = vmatprep.subr.bf16.mxu0 (!%p140_p9), %v613_v1  ;;  %s549_s5 = scalar_lea.vmem (!%p140_p9), %s721_s27, 128 }
  0x15   : > { %s163_s28 = scalar_select %p162_p10, %s659_s16, 1 }
  0x16   : > { %p550_p11 = scmp.ne.s32.totalorder %s721_s27, %s549_s5  ;;  %s617_s16 = smov [#allocation2]  }
  0x17   : > { %s452_s6 = sshll.u32 %s163_s28, 3  ;;  %479 = vmatpush3.bf16.msra.mxu0 %v543_v3 }
  0x18   : > { %s165_s9 = scalar_lea.vmem %s762_s0, %s452_s6  ;;  %480 = vmatprep.subr.bf16.mxu0 %v613_v1  ;;  %p551_p12 = pnand %p550_p11, %p676_p5 }
  0x19   : > { %v167_v5 = vld [vmem:[%s165_s9] sm:$0xff]  ;;  %s553_s6 = sshll.u32 %s617_s16, 4  ;;  %s554_s6 = int_to_ptr.vmem [resolvable:$false] %s553_s6 }
  0x1a   : > { %v168_v7 = vpack.c.bf16 %v167_v5, %v167_v5  ;;  %p552_p13 = pneg %p551_p12  ;;  %s555_s7 = scalar_lea.vmem %s554_s6, 256 }
  0x1b   : > { %481 = vmatpush3.bf16.msra.mxu0 %v210_v6  ;;  %p556_p0 = scmp.lt.s32.totalorder %s721_s27, %s554_s6  ;;  %p557_p1 = scmp.lt.s32.totalorder %s555_s7, %s549_s5 }
  0x1d   : > { %p558_p2 = por %p557_p1, %p556_p0 }
  0x1e   : > { %483 = vmatmul.mubr.msk.bf16.vlgmr.msra.gmra.mrb[0].mxu0 %vm204_vm2, %v168_v7 }
  0x1f   : > { %p559_p3 = pnand %p558_p2, %p552_p13 }
  0xf1   : > { %v246_v9 = vpop.f32.mrb[0].mxu0 }
  0xf2   : > { %v247_v10 = vadd.f32 %v453_v8, %v246_v9  ;;  %v484_v11 = vpop.f32.mrb[1].mxu0 }
  0xf3   : > { %v249_v12 = vpop.f32.mrb[2].mxu0 }
  0xf4   : > { %v485_v13 = vpop.f32.mrb[3].mxu0  ;;  %v254_v14 = vpack.c.bf16 %v247_v10, %v247_v10  ;;  %v252_v17 = vmul.f32 0.14142136, %v247_v10 }
  0xf6   : > { %256 = vrot.lane.b32.xlu0 %v254_v14, %s615_s17  ;;  %v253_v18 = vpack.c.bf16 %v252_v17, %v252_v17 }
 0x168   : > { %v257_v15 = vpop.permute.xlu0 %256 }
 0x169   : > { %v263_v16 = vsel %vm258_vm3, %v257_v15, 0 }
 0x16a   : > { %487 = vmatpush3.bf16.xpose.msra.mxu1 %v263_v16 }
 0x16b   : > { %492 = vmatprep.subr.bf16.mxu1 %v613_v1 }
 0x171   : > { %489 = vmatmul.mubr.msk.bf16.vlgmr.msra.gmra.mrb[0].mxu1 %vm258_vm3, %v253_v18 }
 0x172   : > { %494 = vmatprep.mubr.msk.bf16.mxu1 %vm614_vm0, %v613_v1 }
 0x244   : > { %v299_v22 = vpop.f32.mrb[0].mxu1 }
 0x245   : > { %v310_v23 = vsel %vm309_vm4, %v299_v22, -inf  ;;  %v490_v24 = vpop.f32.mrb[1].mxu1 }
 0x246   : > { %v302_v25 = vpop.f32.mrb[2].mxu1  ;;  %v312_v26 = vsel %vm311_vm5, %v310_v23, -inf }
 0x247   : > { %313 = vmax.xlane.f32.xlu0 %v312_v26  ;;  %v491_v27 = vpop.f32.mrb[3].mxu1 }
 0x2d4   : > { %v314_v28 = vpop.xlane.xlu0 %313 }
 0x2d5   : > { %v315_v29 = vsub.f32 %v310_v23, %v314_v28 }
 0x2d7   : > { %v316_v30 = vmul.f32 1.442695, %v315_v29 }
 0x2d9   : > { %545 = vpow2.f32 %v316_v30 }
 0x2e3   : > { %v546_v31 = vpop.eup %545 }
 0x2e4   : > { %v318_v32 = vsel %vm311_vm5, %v546_v31, 0.0 }
 0x2e5   : > { %319 = vadd.xlane.f32.xlu1 %v318_v32 }
 0x2f6   : > { %324 = vrot.lane.b32.xlu1 %v254_v14, %s616_s19 }
 0x372   : > { %v320_v33 = vpop.xlane.xlu1 %319 }
 0x373   : > { %547 = vrcp.f32 %v320_v33 }
 0x376   : > { %v325_v34 = vpop.permute.xlu1 %324 }
 0x377   : > { %v331_v35 = vsel %vm329_vm6, %v325_v34, 0 }
 0x378   : > { %493 = vmatpush3.bf16.msra.mxu1 %v331_v35 }
 0x37d   : > { %v548_v36 = vpop.eup %547 }
 0x37e   : > { %v322_v37 = vmul.f32 %v548_v36, %v546_v31 }
 0x380   : > { %v323_v38 = vpack.c.bf16 %v322_v37, %v322_v37 }
 0x382   : > { %495 = vmatmul.mubr.msk.bf16.vlgmr.msra.gmra.mrb[4].mxu1 %vm311_vm5, %v323_v38 }
 0x455   : > { %v367_v39 = vpop.f32.mrb[4].mxu1 }
 0x456   : > { %373 = vst.msk [vmem:[%s161_s26] sm:$0xff] %vm258_vm3, %v367_v39  ;;  %v496_v40 = vpop.f32.mrb[5].mxu1 }
 0x457   : > { %v370_v41 = vpop.f32.mrb[6].mxu1 }
 0x458   : > { %562 = shalt.err (!%p559_p3)
}
 0x459   : > { %s563_s8 = scalar_lea.hbm %s719_s30, 128  ;;  %s567_s11 = scalar_lea.hbm %s765_s3, 256 }
 0x45a   : > { %p564_p4 = scmp.ne.s32.totalorder %s719_s30, %s563_s8  ;;  %p568_p9 = scmp.lt.u32.totalorder %s719_s30, %s765_s3 }
 0x45b   : > { %p569_p10 = scmp.lt.u32.totalorder %s567_s11, %s563_s8  ;;  %p571_p12 = scmp.lt.u32.totalorder %s563_s8, %s719_s30 }
 0x45c   : > { %p565_p7 = pnand %p564_p4, %p676_p5 }
 0x45d   : > { %p570_p11 = por %p569_p10, %p568_p9 }
 0x45e   : > { %p566_p8 = pneg %p565_p7 }
 0x45f   : > { %p572_p13 = por %p571_p12, %p570_p11 }
 0x461   : > { %p573_p0 = pnand %p572_p13, %p566_p8 }
 0x463   : > { %576 = shalt.err (!%p573_p0)
}
 0x464   : > { %498 = dma.vmem_to_hbm [thread:$0]  (%p676_p5), %s721_s27, 128, %s719_s30, %s375_s4   ;;  %v497_v42 = vpop.f32.mrb[7].mxu1 }
 0x465 PF: > { %p504_p1 = scmp.ge.s32.totalorder %s611_s15, 2  ;;  %s400_s20 = sand.u32 1, %s599_s12  }
 0x466   : > { %s401_s24 = scalar_lea.sflag [#allocation3], %s400_s20 }
 0x467   : > { %p501_p2 = pnand %p504_p1, %p680_p6 }
 0x469   : > { %594 = dma.done.wait (!%p501_p2), %s401_s24, 128  }
 0x46a   : > { %596 = vsyncadd (!%p501_p2), %s401_s24, 4294967168  ;;  %p13_p3 = scmp.ge.s32.totalorder %s663_s18, 4   ;;  %s768_s12 = smov %s603_s13 }
 0x46b   : > { %s769_s13 = smov %s607_s14  ;;  %s770_s14 = smov %s674_s21 }
 0x46c   : > { %s771_s15 = smov %s663_s18  ;;  %15 = sbr.rel (!%p13_p3) target bundleno = 3 (0x3), region = 67 }
 0x473   :  { %406 = vsyncpa [#allocation3], 1 }
 0x474   :  { %408 = vsyncpa [#allocation3 + $0x1], 1 }

</bundles_post_ra>
